<compile_context>
chip_gen: v7x
topology: tpu7x:2x2x1
jax: 0.10.0
libtpu: 0.0.40
codegen_flags: <defaults>
</compile_context>

<pallas_src>
import functools

import jax
import jax.numpy as jnp
from jax.experimental import pallas as pl
from jax.experimental.pallas import tpu as pltpu

_LANES = 128
_MAX_BLOCK_ROWS = 4096   # 4096 x 128 x 4 B = 2 MiB per input tile
_SUB_ROWS = 512          # in-kernel compute chunk (bounds temp live ranges)
_ACC_ROWS = 32           # wide per-lane accumulator -> independent VALU chains
_NUM_POS = 10000         # hard-coded in the reference _neg_loss


def _focal_loss_kernel(pred_ref, gt_ref, out_ref, *,
                       num_tiles, tiles_per_split, sub_rows, acc_rows,
                       needs_guard):
    """Accumulate sum(pos_loss + neg_loss) for one row-tile into out_ref."""
    i = pl.program_id(1)

    @pl.when(i == 0)
    def _():
        out_ref[...] = jnp.zeros_like(out_ref)

    def compute():
        block_rows = pred_ref.shape[0]
        n_sub = block_rows // sub_rows

        def body(j, carry):
            r0 = pl.multiple_of(j * sub_rows, sub_rows)
            pred = pred_ref[pl.ds(r0, sub_rows), :]
            gt = gt_ref[pl.ds(r0, sub_rows), :]

            is_pos = gt == 1.0
            one_m_pred = 1.0 - pred
            one_m_gt = 1.0 - gt
            omg2 = one_m_gt * one_m_gt
            neg_w = omg2 * omg2                      # (1 - gt)^4

            # One transcendental per element (EUP slot): log(pred) at
            # positives, log(1 - pred) everywhere else.  Exact for pred in
            # (0, 1), same domain assumption as the reference.
            logx = jnp.log(jnp.where(is_pos, pred, one_m_pred))
            # gt is a gaussian heatmap in [0, 1], so "not pos" <=> gt < 1.
            contrib = logx * jnp.where(is_pos,
                                       one_m_pred * one_m_pred,
                                       pred * pred * neg_w)

            # Fold the (sub_rows, 128) chunk into the (acc_rows, 128)
            # accumulator living in the output block (VPU adds only; the
            # single cross-lane reduce happens in the wrapper).
            out_ref[0] += contrib.reshape(
                sub_rows // acc_rows, acc_rows, _LANES).sum(axis=0)
            return carry

        jax.lax.fori_loop(0, n_sub, body, None, unroll=True)

    if needs_guard:
        # Odd tile count: the last step of one split is a padded repeat of a
        # real tile; skip its contribution.
        global_tile = pl.program_id(0) * tiles_per_split + i
        pl.when(global_tile < num_tiles)(compute)
    else:
        compute()


def _focal_sum_jax(pred, gt):
    """Plain-JAX sum(pos_loss + neg_loss); used for the unaligned tail and ref."""
    pred = pred.astype(jnp.float32)
    gt = gt.astype(jnp.float32)
    pos_inds = (gt == 1.0).astype(jnp.float32)
    neg_inds = (gt < 1.0).astype(jnp.float32)
    neg_weights = (1.0 - gt) ** 4
    pos_loss = jnp.log(pred) * (1.0 - pred) ** 2 * pos_inds
    neg_loss = jnp.log(1.0 - pred) * pred ** 2 * neg_weights * neg_inds
    return jnp.sum(pos_loss) + jnp.sum(neg_loss)


def _focal_sum_pallas(pred2d, gt2d, num_tiles, block_rows, sub_rows, acc_rows):
    """Kernel call over an aligned (num_tiles*block_rows, 128) slab."""
    # Two-way split whenever there is more than one tile so the leading
    # "parallel" axis can use both TensorCores on v7x.  Uneven splits are
    # handled with a clamped index_map + in-kernel guard (no even-count req.).
    n_split = 2 if num_tiles >= 2 else 1
    tiles_per_split = -(-num_tiles // n_split)
    needs_guard = (n_split * tiles_per_split) != num_tiles

    def in_index_map(c, i):
        t = c * tiles_per_split + i
        if needs_guard:
            t = jnp.minimum(t, num_tiles - 1)   # keep padded step's DMA in range
        return (t, 0)

    bulk_n = num_tiles * block_rows * _LANES
    tile_bytes = block_rows * _LANES * 4
    # 2 inputs x 2 buffers x tile, plus headroom for in-kernel temporaries and
    # the (tiny) output accumulator.  Safe on v5e/v6e defaults and v7x physical.
    vmem_limit = min(48 * 1024 * 1024, 4 * tile_bytes + 8 * 1024 * 1024)

    kernel = functools.partial(
        _focal_loss_kernel,
        num_tiles=num_tiles, tiles_per_split=tiles_per_split,
        sub_rows=sub_rows, acc_rows=acc_rows, needs_guard=needs_guard)

    partials = pl.pallas_call(
        kernel,
        out_shape=jax.ShapeDtypeStruct((n_split, acc_rows, _LANES), jnp.float32),
        grid_spec=pltpu.PrefetchScalarGridSpec(
            num_scalar_prefetch=0,
            grid=(n_split, tiles_per_split),
            in_specs=[
                pl.BlockSpec((block_rows, _LANES), in_index_map),
                pl.BlockSpec((block_rows, _LANES), in_index_map),
            ],
            # Same output block across the reduction axis -> resident
            # accumulator; one block per split.
            out_specs=pl.BlockSpec((1, acc_rows, _LANES), lambda c, i: (c, 0, 0)),
        ),
        compiler_params=pltpu.CompilerParams(
            dimension_semantics=("parallel", "arbitrary"),
            vmem_limit_bytes=vmem_limit,
        ),
        cost_estimate=pl.CostEstimate(
            flops=20 * bulk_n,
            transcendentals=bulk_n,
            bytes_accessed=2 * bulk_n * 4,
        ),
    )(pred2d, gt2d)
    return jnp.sum(partials)


def focal_loss(pred, gt, *, max_block_rows=_MAX_BLOCK_ROWS):
    """JAX/Pallas equivalent of FocalLoss()(pred, gt). Inputs: NCHW float32."""
    assert pred.shape == gt.shape
    pred_f = jnp.reshape(pred, (-1,)).astype(jnp.float32)
    gt_f = jnp.reshape(gt, (-1,)).astype(jnp.float32)
    total_n = pred_f.shape[0]

    # Large (8,128)-aligned row-tile; multiple of the in-kernel sub-chunk when
    # big enough so the fori_loop divides evenly.
    full_rows = total_n // _LANES
    block_rows = max(8, min(max_block_rows, (full_rows // 8) * 8))
    if block_rows >= _SUB_ROWS:
        block_rows = (block_rows // _SUB_ROWS) * _SUB_ROWS
        sub_rows = _SUB_ROWS
    else:
        sub_rows = block_rows
    acc_rows = _ACC_ROWS if sub_rows % _ACC_ROWS == 0 else 8

    tile_elems = block_rows * _LANES
    num_tiles = total_n // tile_elems
    bulk_n = num_tiles * tile_elems

    total = jnp.float32(0.0)
    if num_tiles > 0:
        bulk_pred = pred_f if bulk_n == total_n else pred_f[:bulk_n]
        bulk_gt = gt_f if bulk_n == total_n else gt_f[:bulk_n]
        pred2d = bulk_pred.reshape(num_tiles * block_rows, _LANES)
        gt2d = bulk_gt.reshape(num_tiles * block_rows, _LANES)
        total = total + _focal_sum_pallas(pred2d, gt2d, num_tiles,
                                          block_rows, sub_rows, acc_rows)

    if bulk_n < total_n:
        # Unaligned tail (< one tile): plain JAX, avoids padding/copying the
        # full flattened tensors in HBM.
        total = total + _focal_sum_jax(pred_f[bulk_n:], gt_f[bulk_n:])

    # loss = 0 - (pos_loss.sum() + neg_loss.sum()) / num_pos   (num_pos = 10000)
    return -(total / jnp.float32(_NUM_POS))


if __name__ == "__main__":
    key = jax.random.PRNGKey(0)

    def make_inputs(k, shape):
        k1, k2, k3 = jax.random.split(k, 3)
        # predictions: probabilities strictly inside (0, 1)
        p = jax.random.uniform(k1, shape, jnp.float32,
                               minval=1e-4, maxval=1.0 - 1e-4)
        # targets: gaussian-heatmap-like values in [0, 1) plus exact 1.0 peaks
        g = jax.random.uniform(k2, shape, jnp.float32, minval=0.0, maxval=0.999)
        peaks = jax.random.uniform(k3, shape) < 0.02
        g = jnp.where(peaks, 1.0, g)
        return p, g

    k_a, k_b, k_c = jax.random.split(key, 3)

    # Main case: NCHW heatmaps, matching the PyTorch module contract.
    pred, gt = make_inputs(k_a, (2, 4, 16, 16))
    loss = focal_loss(pred, gt)
    jax.block_until_ready(loss)
    ref = -_focal_sum_jax(pred, gt) / _NUM_POS
    assert jnp.allclose(loss, ref, rtol=2e-5, atol=1e-6), (loss, ref)

    # Unaligned-tail path: kernel handles the aligned bulk, plain JAX the rest.
    pred, gt = make_inputs(k_b, (3, 5, 33, 17))
    loss = focal_loss(pred, gt)
    jax.block_until_ready(loss)
    ref = -_focal_sum_jax(pred, gt) / _NUM_POS
    assert jnp.allclose(loss, ref, rtol=2e-5, atol=1e-6), (loss, ref)

    # Odd tile count: exercises the two-way split + clamped index map + guard.
    pred, gt = make_inputs(k_c, (2, 4, 32, 96))
    loss = focal_loss(pred, gt, max_block_rows=64)
    jax.block_until_ready(loss)
    ref = -_focal_sum_jax(pred, gt) / _NUM_POS
    assert jnp.allclose(loss, ref, rtol=2e-5, atol=1e-6), (loss, ref)

    print("KERNEL_OK")
</pallas_src>

<mosaic_0001>
module attributes {stable_mosaic.version = 11 : i64} {
  func.func @_focal_loss_kernel(%arg0: i32, %arg1: i32, %arg2: memref<16x128xf32, #tpu.memory_space<vmem>>, %arg3: memref<16x128xf32, #tpu.memory_space<vmem>>, %arg4: memref<1x8x128xf32, #tpu.memory_space<vmem>>) attributes {dimension_semantics = [#tpu.dimension_semantics<parallel>, #tpu.dimension_semantics<arbitrary>], iteration_bounds = array<i64: 1, 1>, scalar_prefetch = 0 : i64, scratch_operands = 0 : i64, tpu.core_type = #tpu.core_type<tc>, window_params = [{transform_indices = @transform_0, window_bounds = array<i64: 16, 128>}, {transform_indices = @transform_1, window_bounds = array<i64: 16, 128>}, {transform_indices = @transform_2, window_bounds = array<i64: 1, 8, 128>}]} {
    %c0_i32 = arith.constant 0 : i32
    %0 = arith.cmpi eq, %arg1, %c0_i32 : i32
    %1 = arith.extui %0 : i1 to i32
    %c0_i32_0 = arith.constant 0 : i32
    %2 = arith.cmpi ne, %1, %c0_i32_0 : i32
    scf.if %2 {
      %cst_12 = arith.constant 0.000000e+00 : f32
      %32 = vector.broadcast %cst_12 : f32 to vector<1x8x128xf32>
      %c0_13 = arith.constant 0 : index
      %c0_14 = arith.constant 0 : index
      %c0_15 = arith.constant 0 : index
      %33 = vector.load %arg4[%c0_13, %c0_14, %c0_15] : memref<1x8x128xf32, #tpu.memory_space<vmem>>, vector<1x8x128xf32>
      tpu.vector_store %arg4[%c0_13, %c0_14, %c0_15], %32 {strides = array<i32>} : memref<1x8x128xf32, #tpu.memory_space<vmem>>, vector<1x8x128xf32>,
    } else {
    }
    %c0_i32_1 = arith.constant 0 : i32
    %c16_i32 = arith.constant 16 : i32
    %3 = arith.muli %c0_i32_1, %c16_i32 : i32
    %4 = tpu.assume_multiple %3, 16 : i32
    %5 = arith.index_cast %4 : i32 to index
    %c0 = arith.constant 0 : index
    %6 = vector.load %arg2[%5, %c0] : memref<16x128xf32, #tpu.memory_space<vmem>>, vector<16x128xf32>
    %7 = arith.index_cast %4 : i32 to index
    %c0_2 = arith.constant 0 : index
    %8 = vector.load %arg3[%7, %c0_2] : memref<16x128xf32, #tpu.memory_space<vmem>>, vector<16x128xf32>
    %cst = arith.constant 1.000000e+00 : f32
    %9 = vector.broadcast %cst : f32 to vector<16x128xf32>
    %10 = arith.cmpf oeq, %8, %9 : vector<16x128xf32>
    %cst_3 = arith.constant 1.000000e+00 : f32
    %11 = vector.broadcast %cst_3 : f32 to vector<16x128xf32>
    %12 = arith.subf %11, %6 : vector<16x128xf32>
    %cst_4 = arith.constant 1.000000e+00 : f32
    %13 = vector.broadcast %cst_4 : f32 to vector<16x128xf32>
    %14 = arith.subf %13, %8 : vector<16x128xf32>
    %15 = arith.mulf %14, %14 : vector<16x128xf32>
    %16 = arith.mulf %15, %15 : vector<16x128xf32>
    %17 = arith.select %10, %6, %12 : vector<16x128xi1>, vector<16x128xf32>
    %18 = math.log %17 : vector<16x128xf32>
    %19 = arith.mulf %12, %12 : vector<16x128xf32>
    %20 = arith.mulf %6, %6 : vector<16x128xf32>
    %21 = arith.mulf %20, %16 : vector<16x128xf32>
    %22 = arith.select %10, %19, %21 : vector<16x128xi1>, vector<16x128xf32>
    %23 = arith.mulf %18, %22 : vector<16x128xf32>
    %c0_5 = arith.constant 0 : index
    %c0_6 = arith.constant 0 : index
    %c0_7 = arith.constant 0 : index
    %24 = vector.load %arg4[%c0_5, %c0_6, %c0_7] : memref<1x8x128xf32, #tpu.memory_space<vmem>>, vector<1x8x128xf32>
    %25 = vector.shape_cast %24 : vector<1x8x128xf32> to vector<8x128xf32>
    %26 = vector.shape_cast %23 : vector<16x128xf32> to vector<2x8x128xf32>
    %cst_8 = arith.constant dense<0.000000e+00> : vector<8x128xf32>
    %27 = vector.multi_reduction <add>, %26, %cst_8 [0] : vector<2x8x128xf32> to vector<8x128xf32>
    %28 = arith.addf %25, %27 : vector<8x128xf32>
    %c0_9 = arith.constant 0 : index
    %c0_10 = arith.constant 0 : index
    %c0_11 = arith.constant 0 : index
    %29 = vector.load %arg4[%c0_9, %c0_10, %c0_11] : memref<1x8x128xf32, #tpu.memory_space<vmem>>, vector<1x8x128xf32>
    %30 = vector.shape_cast %29 : vector<1x8x128xf32> to vector<8x128xf32>
    %31 = vector.shape_cast %28 : vector<8x128xf32> to vector<1x8x128xf32>
    tpu.vector_store %arg4[%c0_9, %c0_10, %c0_11], %31 {strides = array<i32>} : memref<1x8x128xf32, #tpu.memory_space<vmem>>, vector<1x8x128xf32>,
    %c1_i32 = arith.constant 1 : i32
    return
  }
  func.func @transform_0(%arg0: i32, %arg1: i32) -> (i32, i32) {
    %c1_i32 = arith.constant 1 : i32
    %0 = arith.muli %arg0, %c1_i32 : i32
    %1 = arith.addi %0, %arg1 : i32
    %c0_i32 = arith.constant 0 : i32
    %c0_i32_0 = arith.constant 0 : i32
    return %1, %c0_i32 : i32, i32
  }
  func.func @transform_1(%arg0: i32, %arg1: i32) -> (i32, i32) {
    %c1_i32 = arith.constant 1 : i32
    %0 = arith.muli %arg0, %c1_i32 : i32
    %1 = arith.addi %0, %arg1 : i32
    %c0_i32 = arith.constant 0 : i32
    %c0_i32_0 = arith.constant 0 : i32
    return %1, %c0_i32 : i32, i32
  }
  func.func @transform_2(%arg0: i32, %arg1: i32) -> (i32, i32, i32) {
    %c0_i32 = arith.constant 0 : i32
    %c0_i32_0 = arith.constant 0 : i32
    %c0_i32_1 = arith.constant 0 : i32
    return %arg0, %c0_i32, %c0_i32_0 : i32, i32, i32
  }
}

</mosaic_0001>

<bundles_post_ra>
// kernel: tpu_custom_call.1
= control target key start
LH: loop header
LB: loop body
LE: loop exit
PB: predicated region body
PF: predicated region fallthrough
CT: control target
= control target key end

     0   :  { %7 = vsyncpa [#allocation3], 0  ;;  %s249_s0 = inlined_call_operand.hbm [shape: f32[16,128], index: 0, kind: input, shape index: {}]   ;;  %s250_s1 = inlined_call_operand.hbm [shape: f32[16,128], index: 1, kind: input, shape index: {}]   ;;  %s251_s2 = inlined_call_operand.hbm [shape: f32[1,8,128], index: 2, kind: output, shape index: {}]  }
   0x1   :  { %8 = vsyncpa [#allocation6], 0 }
   0x2   :  { %9 = vsyncpa [#allocation4], 0  ;;  %s189_s9 = smov [#allocation2]   ;;  %s117_s13 = scalar_lea.hbm %s249_s0, 256 }
   0x3   :  { %s19_s10 = sshll.u32 %s189_s9, 4  ;;  %p118_p0 = scmp.ne.s32.totalorder %s249_s0, %s117_s13  ;;  %s20_s10 = int_to_ptr.vmem [resolvable:$true] %s19_s10 }
   0x4   :  { %p121_p1 = scmp.lt.u32.totalorder %s117_s13, %s249_s0 }
   0x6   :  { %p123_p2 = pnand %p121_p1, %p118_p0 }
   0x8   :  { %126 = shalt.err (!%p123_p2)
}
   0x9   :  { %s127_s18 = scalar_lea.vmem %s20_s10, 256  ;;  %p132_p4 = scmp.lt.s32.totalorder %s20_s10, %s20_s10 }
   0xa   :  { %p128_p3 = scmp.ne.s32.totalorder %s20_s10, %s127_s18  ;;  %p133_p5 = scmp.lt.s32.totalorder %s127_s18, %s127_s18 }
   0xc   :  { %p134_p6 = por %p133_p5, %p132_p4 }
   0xe   :  { %p135_p7 = pnand %p134_p6, %p128_p3 }
  0x10   :  { %138 = shalt.err (!%p135_p7)
}
  0x11   :  { %s190_s19 = smov 128   ;;  %s191_s20 = smov 8  }
  0x12   :  { %25 = dma.hbm_to_vmem [thread:$0]  %s249_s0, 256, %s20_s10, [#allocation3], %s190_s19, %s190_s19, %s191_s20  }
  0x13   :  { %s192_s23 = smov [#allocation5]   ;;  %s139_s27 = scalar_lea.hbm %s250_s1, 256 }
  0x14   :  { %s35_s24 = sshll.u32 %s192_s23, 4  ;;  %p140_p8 = scmp.ne.s32.totalorder %s250_s1, %s139_s27  ;;  %s36_s24 = int_to_ptr.vmem [resolvable:$true] %s35_s24 }
  0x15   :  { %p143_p9 = scmp.lt.u32.totalorder %s139_s27, %s250_s1 }
  0x17   :  { %p145_p10 = pnand %p143_p9, %p140_p8 }
  0x19   :  { %148 = shalt.err (!%p145_p10)
}
  0x1a   :  { %s149_s4 = scalar_lea.vmem %s36_s24, 256  ;;  %p154_p12 = scmp.lt.s32.totalorder %s36_s24, %s36_s24 }
  0x1b   :  { %p150_p11 = scmp.ne.s32.totalorder %s36_s24, %s149_s4  ;;  %p155_p13 = scmp.lt.s32.totalorder %s149_s4, %s149_s4 }
  0x1d   :  { %p156_p0 = por %p155_p13, %p154_p12 }
  0x1f   :  { %p157_p1 = pnand %p156_p0, %p150_p11 }
  0x21   :  { %160 = shalt.err (!%p157_p1)
}
  0x22   :  { %41 = dma.hbm_to_vmem [thread:$0]  %s250_s1, 256, %s36_s24, [#allocation6], %s190_s19, %s190_s19, %s191_s20  }
  0x23   :  { %183 = dma.done.wait [#allocation3], 256  }
  0x24   :  { %184 = vsyncadd [#allocation3], 4294967040 }
  0x25   :  { %185 = dma.done.wait [#allocation6], 256  }
  0x26   :  { %186 = vsyncadd [#allocation6], 4294967040  ;;  %v57_v0 = vld [vmem:[#allocation2] sm:$0xff]  ;;  %v58_v1 = vld [vmem:[#allocation2 + $0x8] sm:$0xff]  ;;  %s193_s1 = smov [#allocation7]  }
  0x27   :  { %v59_v2 = vld [vmem:[#allocation5] sm:$0xff]  ;;  %v60_v3 = vld [vmem:[#allocation5 + $0x8] sm:$0xff]  ;;  %v63_v4 = vsub.f32 1.0, %v57_v0  ;;  %v64_v5 = vsub.f32 1.0, %v58_v1  ;;  %v79_v13 = vmul.f32 %v57_v0, %v57_v0  ;;  %v80_v15 = vmul.f32 %v58_v1, %v58_v1  ;;  %s97_s6 = sshll.u32 %s193_s1, 4  ;;  %s98_s6 = int_to_ptr.vmem [resolvable:$true] %s97_s6 }
  0x28   :  { %vm61_vm0 = vcmp.eq.f32.partialorder %v59_v2, 1.0  ;;  %v65_v6 = vsub.f32 1.0, %v59_v2  ;;  %vm62_vm1 = vcmp.eq.f32.partialorder %v60_v3, 1.0  ;;  %v66_v7 = vsub.f32 1.0, %v60_v3  ;;  %s161_s7 = scalar_lea.vmem %s98_s6, 128  ;;  %p166_p3 = scmp.lt.s32.totalorder %s98_s6, %s98_s6 }
  0x29   :  { %v71_v9 = vsel %vm61_vm0, %v57_v0, %v63_v4  ;;  %v72_v10 = vsel %vm62_vm1, %v58_v1, %v64_v5  ;;  %v77_v16 = vmul.f32 %v63_v4, %v63_v4  ;;  %v78_v18 = vmul.f32 %v64_v5, %v64_v5  ;;  %p162_p2 = scmp.ne.s32.totalorder %s98_s6, %s161_s7  ;;  %p167_p4 = scmp.lt.s32.totalorder %s161_s7, %s161_s7 }
  0x2a   :  { %v67_v8 = vmul.f32 %v65_v6, %v65_v6  ;;  %v68_v11 = vmul.f32 %v66_v7, %v66_v7  ;;  %113 = vlog2.f32 %v71_v9 }
  0x2b   :  { %115 = vlog2.f32 %v72_v10  ;;  %p168_p5 = por %p167_p4, %p166_p3 }
  0x2c   :  { %v69_v12 = vmul.f32 %v67_v8, %v67_v8  ;;  %v70_v14 = vmul.f32 %v68_v11, %v68_v11 }
  0x2d   :  { %p169_p6 = pnand %p168_p5, %p162_p2 }
  0x2e   :  { %v81_v17 = vmul.f32 %v79_v13, %v69_v12  ;;  %v82_v19 = vmul.f32 %v80_v15, %v70_v14 }
  0x30   :  { %v83_v21 = vsel %vm61_vm0, %v77_v16, %v81_v17  ;;  %v84_v24 = vsel %vm62_vm1, %v78_v18, %v82_v19 }
  0x34   :  { %v114_v20 = vpop.eup %113 }
  0x35   :  { %v116_v22 = vpop.eup %115  ;;  %v74_v23 = vmul.f32 0.6931472, %v114_v20 }
  0x36   :  { %v76_v25 = vmul.f32 0.6931472, %v116_v22 }
  0x37   :  { %v85_v26 = vmul.f32 %v83_v21, %v74_v23 }
  0x38   :  { %v86_v27 = vmul.f32 %v84_v24, %v76_v25 }
  0x3a   :  { %v88_v28 = vadd.f32 %v86_v27, %v85_v26 }
  0x3c   :  { %90 = vst [vmem:[#allocation7] sm:$0xff] %v88_v28 }
  0x3d   :  { %172 = shalt.err (!%p169_p6)
}
  0x3e   :  { %s173_s10 = scalar_lea.hbm %s251_s2, 128 }
  0x3f   :  { %p174_p7 = scmp.ne.s32.totalorder %s251_s2, %s173_s10  ;;  %p177_p8 = scmp.lt.u32.totalorder %s173_s10, %s251_s2 }
  0x41   :  { %p179_p9 = pnand %p177_p8, %p174_p7 }
  0x43   :  { %182 = shalt.err (!%p179_p9)
}
  0x44   :  { %100 = dma.vmem_to_hbm [thread:$0]  %s98_s6, 128, %s251_s2, [#allocation4]  }
  0x45   :  { %187 = dma.done.wait [#allocation4], 128  }
  0x46   :  { %188 = vsyncadd [#allocation4], 4294967168 }
  0x47   :  { %104 = vsyncpa [#allocation3], 1 }
  0x48   :  { %105 = vsyncpa [#allocation6], 1 }
  0x49   :  { %106 = vsyncpa [#allocation4], 1 }

</bundles_post_ra>
